<compile_context>
chip_gen: v7x
topology: tpu7x:2x2x1
jax: 0.10.0
libtpu: 0.0.40
codegen_flags: <defaults>
</compile_context>

<pallas_src>
import jax
import jax.numpy as jnp
from jax.experimental import pallas as pl
from jax.experimental.pallas import tpu as pltpu

TWO_PI = 2.0 * 3.1415  # matches the PyTorch constant exactly (not math.pi)


def fourier_embed_kernel(t_ref, w_ref, b_ref, o_ref):
    # t_ref: (B_pad, 1) resident; w_ref/b_ref: (1, E_pad) resident (already
    # pre-scaled by 2*pi); o_ref: (tm, E_pad) output tile for this grid step.
    tm = o_ref.shape[0]
    start = pl.multiple_of(pl.program_id(0) * tm, tm)
    t = t_ref[pl.ds(start, tm), :]                  # (tm, 1)
    # VPU mul+add (broadcast (tm,1)x(1,E)), cos on the EUP, lane-dense f32 store.
    o_ref[...] = jnp.cos(t * w_ref[...] + b_ref[...])


def _round_up(x, m):
    return ((x + m - 1) // m) * m


def _choose_tm(B, E_pad, dtype_bytes=4, vmem_budget_bytes=4 << 20):
    """Pick a row tile: as large as possible (<=512), multiple of 8, and small
    enough that one double-buffered output tile stays well inside scoped VMEM
    on every chip (v5e 16 MiB scoped default, v7x 64 MiB physical)."""
    max_rows_vmem = max(8, vmem_budget_bytes // (E_pad * dtype_bytes))
    tm = min(512, max_rows_vmem, _round_up(B, 8))
    tm = max(8, (tm // 8) * 8)
    return tm


def fourier_embedding(t, weight, bias):
    """t: (B, 1) f32, weight/bias: (1, E) f32 -> (B, E) f32."""
    B, one = t.shape
    assert one == 1
    _, E = weight.shape

    # Fold the 2*pi constant into the (1, E) parameters (O(E) work, done once).
    w2 = (TWO_PI * weight).astype(jnp.float32)
    b2 = (TWO_PI * bias).astype(jnp.float32)

    # Lane-dense padding of the embedding dim.
    E_pad = _round_up(E, 128)
    if E_pad != E:
        w2 = jnp.pad(w2, ((0, 0), (0, E_pad - E)))
        b2 = jnp.pad(b2, ((0, 0), (0, E_pad - E)))

    # Row tile + batch padding so any B works.
    tm = _choose_tm(B, E_pad)
    B_pad = _round_up(B, tm)
    t_pad = t.astype(jnp.float32)
    if B_pad != B:
        t_pad = jnp.pad(t_pad, ((0, B_pad - B), (0, 0)))

    grid = (B_pad // tm,)
    out = pl.pallas_call(
        fourier_embed_kernel,
        out_shape=jax.ShapeDtypeStruct((B_pad, E_pad), jnp.float32),
        grid_spec=pl.GridSpec(
            grid=grid,
            in_specs=[
                pl.BlockSpec((B_pad, 1), lambda i: (0, 0)),   # t, fully resident
                pl.BlockSpec((1, E_pad), lambda i: (0, 0)),   # 2*pi*weight, resident
                pl.BlockSpec((1, E_pad), lambda i: (0, 0)),   # 2*pi*bias, resident
            ],
            out_specs=pl.BlockSpec((tm, E_pad), lambda i: (i, 0)),
        ),
        compiler_params=pltpu.CompilerParams(
            dimension_semantics=("parallel",),
        ),
    )(t_pad, w2, b2)

    if B_pad != B or E_pad != E:
        out = out[:B, :E]
    return out


def fourier_embedding_ref(t, weight, bias):
    return jnp.cos(TWO_PI * (t * weight + bias))


if __name__ == "__main__":
    key = jax.random.PRNGKey(0)
    k_t, k_w, k_b = jax.random.split(key, 3)

    batch = 16
    embed_dim = 128

    # deterministic "randn"-style parameter init (synthetic, not a checkpoint)
    weight = jax.random.normal(k_w, (1, embed_dim), dtype=jnp.float32)
    bias = jax.random.normal(k_b, (1, embed_dim), dtype=jnp.float32)

    # diffusion timesteps, shape (B, 1)
    t = jax.random.uniform(k_t, (batch, 1), dtype=jnp.float32)

    out = fourier_embedding(t, weight, bias)
    out = jax.block_until_ready(out)

    ref = fourier_embedding_ref(t, weight, bias)
    assert out.shape == (batch, embed_dim)
    assert jnp.allclose(out, ref, atol=1e-5, rtol=1e-5)

    print("KERNEL_OK")
</pallas_src>

<mosaic_0001>
module attributes {stable_mosaic.version = 11 : i64} {
  func.func @fourier_embed_kernel(%arg0: i32, %arg1: memref<16x1xf32, #tpu.memory_space<vmem>>, %arg2: memref<1x128xf32, #tpu.memory_space<vmem>>, %arg3: memref<1x128xf32, #tpu.memory_space<vmem>>, %arg4: memref<16x128xf32, #tpu.memory_space<vmem>>) attributes {dimension_semantics = [#tpu.dimension_semantics<parallel>], iteration_bounds = array<i64: 1>, scalar_prefetch = 0 : i64, scratch_operands = 0 : i64, tpu.core_type = #tpu.core_type<tc>, window_params = [{pipeline_mode = #tpu.pipeline_mode<synchronous>, transform_indices = @transform_0, window_bounds = array<i64: 16, 1>}, {pipeline_mode = #tpu.pipeline_mode<synchronous>, transform_indices = @transform_1, window_bounds = array<i64: 1, 128>}, {pipeline_mode = #tpu.pipeline_mode<synchronous>, transform_indices = @transform_2, window_bounds = array<i64: 1, 128>}, {transform_indices = @transform_3, window_bounds = array<i64: 16, 128>}]} {
    %c16_i32 = arith.constant 16 : i32
    %0 = arith.muli %arg0, %c16_i32 : i32
    %1 = tpu.assume_multiple %0, 16 : i32
    %2 = arith.index_cast %1 : i32 to index
    %c0 = arith.constant 0 : index
    %3 = vector.load %arg1[%2, %c0] : memref<16x1xf32, #tpu.memory_space<vmem>>, vector<16x1xf32>
    %c0_0 = arith.constant 0 : index
    %c0_1 = arith.constant 0 : index
    %4 = vector.load %arg2[%c0_0, %c0_1] : memref<1x128xf32, #tpu.memory_space<vmem>>, vector<1x128xf32>
    %5 = vector.broadcast %3 : vector<16x1xf32> to vector<16x128xf32>
    %6 = vector.broadcast %4 : vector<1x128xf32> to vector<16x128xf32>
    %7 = arith.mulf %5, %6 : vector<16x128xf32>
    %c0_2 = arith.constant 0 : index
    %c0_3 = arith.constant 0 : index
    %8 = vector.load %arg3[%c0_2, %c0_3] : memref<1x128xf32, #tpu.memory_space<vmem>>, vector<1x128xf32>
    %9 = vector.broadcast %8 : vector<1x128xf32> to vector<16x128xf32>
    %10 = arith.addf %7, %9 : vector<16x128xf32>
    %11 = math.cos %10 : vector<16x128xf32>
    %c0_4 = arith.constant 0 : index
    %c0_5 = arith.constant 0 : index
    %12 = vector.load %arg4[%c0_4, %c0_5] : memref<16x128xf32, #tpu.memory_space<vmem>>, vector<16x128xf32>
    tpu.vector_store %arg4[%c0_4, %c0_5], %11 {strides = array<i32>} : memref<16x128xf32, #tpu.memory_space<vmem>>, vector<16x128xf32>,
    return
  }
  func.func @transform_0(%arg0: i32) -> (i32, i32) {
    %c0_i32 = arith.constant 0 : i32
    %c0_i32_0 = arith.constant 0 : i32
    %c0_i32_1 = arith.constant 0 : i32
    return %c0_i32, %c0_i32_0 : i32, i32
  }
  func.func @transform_1(%arg0: i32) -> (i32, i32) {
    %c0_i32 = arith.constant 0 : i32
    %c0_i32_0 = arith.constant 0 : i32
    %c0_i32_1 = arith.constant 0 : i32
    return %c0_i32, %c0_i32_0 : i32, i32
  }
  func.func @transform_2(%arg0: i32) -> (i32, i32) {
    %c0_i32 = arith.constant 0 : i32
    %c0_i32_0 = arith.constant 0 : i32
    %c0_i32_1 = arith.constant 0 : i32
    return %c0_i32, %c0_i32_0 : i32, i32
  }
  func.func @transform_3(%arg0: i32) -> (i32, i32) {
    %c0_i32 = arith.constant 0 : i32
    %c0_i32_0 = arith.constant 0 : i32
    return %arg0, %c0_i32 : i32, i32
  }
}

</mosaic_0001>

<bundles_post_ra>
// kernel: tpu_custom_call.1
= control target key start
LH: loop header
LB: loop body
LE: loop exit
PB: predicated region body
PF: predicated region fallthrough
CT: control target
= control target key end

     0   :  { %v332_v1 = vmov 0   ;;  %s462_s0 = inlined_call_operand.vmem [shape: f32[16,1], index: 0, kind: input, shape index: {}]   ;;  %s463_s1 = inlined_call_operand.vmem [shape: f32[1,128], index: 1, kind: input, shape index: {}]   ;;  %s464_s2 = inlined_call_operand.vmem [shape: f32[1,128], index: 2, kind: input, shape index: {}]   ;;  %s465_s3 = inlined_call_operand.hbm [shape: f32[16,128], index: 3, kind: output, shape index: {}]  }
   0x1   :  { %v17_v0 = vld [vmem:[%s462_s0] sm:$0xff]  ;;  %299 = vset.pattern.permute.xlu0 %v332_v1  ;;  %v18_v2 = vld [vmem:[%s462_s0 + $0x8] sm:$0xff] }
   0x2   :  { %22 = vperm.xlu0 %299, %v17_v0  }
   0x3   :  { %8 = vsyncpa [#allocation3], 0  ;;  %v271_v3 = vld [vmem:[%s463_s1] ss:$0 sm:$0xff]  ;;  %v333_v27 = vmov 683565275  }
   0x4   :  { %v272_v4 = vld [vmem:[%s464_s2] ss:$0 sm:$0xff]  ;;  %v334_v31 = vmov 2475754826   ;;  %v335_v33 = vmov 2131351028  }
   0x5   :  { %v336_v35 = vmov 2102212464   ;;  %v337_v37 = vmov 920167782   ;;  %v338_v44 = vmov 1326507024  }
   0x6   :  { %27 = vperm.xlu0 %299, %v18_v2   ;;  %s339_s0 = smov [#allocation2]  }
   0x7   :  { %s260_s1 = sshll.u32 %s339_s0, 4  ;;  %s261_s1 = int_to_ptr.vmem [resolvable:$true] %s260_s1 }
   0x8   :  { %s308_s2 = scalar_lea.vmem %s261_s1, 256  ;;  %p313_p1 = scmp.lt.s32.totalorder %s261_s1, %s261_s1 }
   0x9   :  { %p309_p0 = scmp.ne.s32.totalorder %s261_s1, %s308_s2  ;;  %p314_p2 = scmp.lt.s32.totalorder %s308_s2, %s308_s2 }
   0xb   :  { %p315_p3 = por %p314_p2, %p313_p1 }
   0xd   :  { %p316_p4 = pnand %p315_p3, %p309_p0 }
  0x81   :  { %v23_v5 = vpop.permute.xlu0 %22 }
  0x82   :  { %v36_v6 = vmul.f32 %v271_v3, %v23_v5 }
  0x84   :  { %v374_v7 = vadd.f32 %v272_v4, %v36_v6 }
  0x85   :  { %v28_v8 = vpop.permute.xlu0 %27 }
  0x86   :  { %v47_v9 = vand.u32 2147483647, %v374_v7  ;;  %v50_v10 = vand.u32 2139095040, %v374_v7  ;;  %v37_v11 = vmul.f32 %v271_v3, %v28_v8  ;;  %vm49_vm14 = vcmp.lt.s32.totalorder %v374_v7, 0 }
  0x88   :  { %v51_v12 = vshrl.u32 %v50_v10, 23  ;;  %v378_v13 = vadd.f32 %v272_v4, %v37_v11  ;;  %v54_v14 = vand.u32 8388607, %v47_v9  ;;  %vm427_vm15 = vcmp.le.f32.partialorder %v47_v9, 0.7853982 }
  0x8a   :  { %v273_v15 = vadd.s32 4294967169, %v51_v12  ;;  %v153_v16 = vand.u32 2139095040, %v378_v13  ;;  %v55_v18 = vor.u32 8388608, %v54_v14  ;;  %v150_v20 = vand.u32 2147483647, %v378_v13 }
  0x8c   :  { %v57_v17 = vadd.s32 1, %v273_v15  ;;  %v154_v19 = vshrl.u32 %v153_v16, 23  ;;  %v384_v25 = vshll.u32 %v55_v18, 8  ;;  %v157_v29 = vand.u32 8388607, %v150_v20 }
  0x8e   :  { %vm58_vm0 = vcmp.gt.s32.totalorder %v57_v17, 0  ;;  %v277_v22 = vadd.s32 4294967169, %v154_v19  ;;  %v158_v59 = vor.u32 8388608, %v157_v29 }
  0x8f   :  { %v59_v21 = vsel %vm58_vm0, %v57_v17, 0  ;;  %vm152_vm0 = vcmp.lt.s32.totalorder %v378_v13, 0 }
  0x90   :  { %v60_v23 = vshrl.u32 %v59_v21, 5  ;;  %v61_v24 = vand.u32 31, %v59_v21  ;;  %v160_v30 = vadd.s32 1, %v277_v22  ;;  %v198_v10 = vshll.u32 %v158_v59, 8 }
  0x92   :  { %v62_v26 = vsub.s32 32, %v61_v24  ;;  %v64_v28 = vshll.u32 %v333_v27, %v61_v24  ;;  %v67_v32 = vshll.u32 %v334_v31, %v61_v24  ;;  %v70_v34 = vshll.u32 %v335_v33, %v61_v24 }
  0x93   :  { %v73_v36 = vshll.u32 %v336_v35, %v61_v24  ;;  %v76_v38 = vshll.u32 %v337_v37, %v61_v24  ;;  %vm79_vm1 = vcmp.lt.s32.totalorder %v60_v23, 1  ;;  %vm81_vm2 = vcmp.lt.s32.totalorder %v60_v23, 3 }
  0x94   :  { %v65_v39 = vshrl.u32 %v334_v31, %v62_v26  ;;  %v68_v40 = vshrl.u32 %v335_v33, %v62_v26  ;;  %v71_v41 = vshrl.u32 %v336_v35, %v62_v26  ;;  %v63_v42 = vshrl.u32 %v333_v27, %v62_v26 }
  0x95   :  { %v74_v43 = vshrl.u32 %v337_v37, %v62_v26  ;;  %v77_v45 = vshrl.u32 %v338_v44, %v62_v26  ;;  %vm161_vm3 = vcmp.gt.s32.totalorder %v160_v30, 0  ;;  %vm82_vm4 = vcmp.lt.s32.totalorder %v60_v23, 4 }
  0x96   :  { %v66_v46 = vor.u32 %v65_v39, %v64_v28  ;;  %v69_v47 = vor.u32 %v68_v40, %v67_v32  ;;  %v72_v48 = vor.u32 %v71_v41, %v70_v34  ;;  %v162_v51 = vsel %vm161_vm3, %v160_v30, 0 }
  0x97   :  { %v75_v49 = vor.u32 %v74_v43, %v73_v36  ;;  %v78_v50 = vor.u32 %v77_v45, %v76_v38  ;;  %vm80_vm5 = vcmp.lt.s32.totalorder %v60_v23, 2  ;;  %v164_v62 = vand.u32 31, %v162_v51 }
  0x98   :  { %v83_v52 = vsel %vm79_vm1, %v63_v42, %v66_v46  ;;  %v84_v53 = vsel %vm82_vm4, %v72_v48, 2102212464  ;;  %v87_v54 = vsel %vm79_vm1, %v66_v46, %v69_v47  ;;  %v91_v55 = vsel %vm79_vm1, %v69_v47, %v72_v48 }
  0x99   :  { %v85_v56 = vsel %vm81_vm2, %v69_v47, %v84_v53  ;;  %v88_v57 = vsel %vm82_vm4, %v75_v49, 920167782  ;;  %v92_v58 = vsel %vm82_vm4, %v78_v50, 1326507024  ;;  %v163_v6 = vshrl.u32 %v162_v51, 5 }
  0x9a   :  { %v89_v60 = vsel %vm81_vm2, %v72_v48, %v88_v57  ;;  %v93_v61 = vsel %vm81_vm2, %v75_v49, %v92_v58  ;;  %v86_v63 = vsel %vm80_vm5, %v83_v52, %v85_v56  ;;  %v165_v8 = vsub.s32 32, %v164_v62 }
  0x9b   :  { %v90_v0 = vsel %vm80_vm5, %v87_v54, %v89_v60  ;;  %v94_v1 = vsel %vm80_vm5, %v91_v55, %v93_v61  ;;  %v102_v11 = vmul.u32 %v384_v25, %v86_v63  ;;  %v167_v12 = vshll.u32 %v333_v27, %v164_v62 }
  0x9c   :  { %v397_v2 = vmul.u32.u64.low %v384_v25, %v94_v1  ;;  %v398_v3 = vmul.u32.u64.high %v384_v25, %v94_v1, %v397_v2  ;;  %v401_v4 = vmul.u32.u64.low %v384_v25, %v90_v0  ;;  %v402_v5 = vmul.u32.u64.high %v384_v25, %v90_v0, %v401_v4 }
  0x9d   :  { %v170_v14 = vshll.u32 %v334_v31, %v164_v62  ;;  %v173_v15 = vshll.u32 %v335_v33, %v164_v62  ;;  %v168_v16 = vshrl.u32 %v334_v31, %v165_v8  ;;  %v171_v17 = vshrl.u32 %v335_v33, %v165_v8 }
  0x9e   :  { %v174_v18 = vshrl.u32 %v336_v35, %v165_v8  ;;  %v176_v19 = vshll.u32 %v336_v35, %v164_v62  ;;  %vm104_vm6 = vc.u32 %v398_v3, %v401_v4  ;;  %v105_v21 = vadd.s32 1, %v402_v5 }
  0x9f   :  { %v177_v22 = vshrl.u32 %v337_v37, %v165_v8  ;;  %v179_v23 = vshll.u32 %v337_v37, %v164_v62  ;;  %v169_v24 = vor.u32 %v168_v16, %v167_v12  ;;  %v172_v26 = vor.u32 %v171_v17, %v170_v14 }
  0xa0   :  { %v175_v28 = vor.u32 %v174_v18, %v173_v15  ;;  %v180_v29 = vshrl.u32 %v338_v44, %v165_v8  ;;  %v106_v25 = vsel %vm104_vm6, %v105_v21, %v402_v5  ;;  %vm182_vm7 = vcmp.lt.s32.totalorder %v163_v6, 1 }
  0xa1   :  { %v178_v30 = vor.u32 %v177_v22, %v176_v19  ;;  %vm185_vm8 = vcmp.lt.s32.totalorder %v163_v6, 4  ;;  %v107_v31 = vadd.s32 %v106_v25, %v102_v11  ;;  %vm184_vm9 = vcmp.lt.s32.totalorder %v163_v6, 3 }
  0xa2   :  { %v181_v32 = vor.u32 %v180_v29, %v179_v23  ;;  %v187_v33 = vsel %vm185_vm8, %v175_v28, 2102212464  ;;  %v166_v34 = vshrl.u32 %v333_v27, %v165_v8  ;;  %v190_v35 = vsel %vm182_vm7, %v169_v24, %v172_v26 }
  0xa3   :  { %v191_v36 = vsel %vm185_vm8, %v178_v30, 920167782  ;;  %v194_v38 = vsel %vm182_vm7, %v172_v26, %v175_v28  ;;  %v108_v39 = vadd.s32 536870912, %v107_v31  ;;  %vm183_vm10 = vcmp.lt.s32.totalorder %v163_v6, 2 }
  0xa4   :  { %v192_v37 = vsel %vm184_vm9, %v175_v28, %v191_v36  ;;  %v195_v40 = vsel %vm185_vm8, %v181_v32, 1326507024  ;;  %v186_v41 = vsel %vm182_vm7, %v166_v34, %v169_v24  ;;  %v188_v42 = vsel %vm184_vm9, %v172_v26, %v187_v33 }
  0xa5   :  { %v193_v43 = vsel %vm183_vm10, %v190_v35, %v192_v37  ;;  %v196_v44 = vsel %vm184_vm9, %v178_v30, %v195_v40  ;;  %v109_v45 = vshrl.u32 %v108_v39, 30  ;;  %v189_v51 = vsel %vm183_vm10, %v186_v41, %v188_v42 }
  0xa6   :  { %v197_v46 = vsel %vm183_vm10, %v194_v38, %v196_v44  ;;  %v412_v47 = vmul.u32.u64.low %v198_v10, %v193_v43  ;;  %v413_v48 = vmul.u32.u64.high %v198_v10, %v193_v43, %v412_v47  ;;  %v205_v54 = vmul.u32 %v198_v10, %v189_v51 }
  0xa7   :  { %v415_v49 = vmul.u32.u64.low %v198_v10, %v197_v46  ;;  %v416_v50 = vmul.u32.u64.high %v198_v10, %v197_v46, %v415_v49  ;;  %v110_v27 = vshll.u32 %v109_v45, 30  ;;  %v103_v2 = vadd.s32 %v401_v4, %v398_v3 }
  0xa8   :  { %v208_v53 = vadd.s32 1, %v413_v48  ;;  %v133_v33 = vsub.s32 4, %v109_v45  ;;  %vm439_vm1 = vcmp.le.f32.partialorder %v150_v20, 0.7853982  ;;  %vm139_vm5 = vweird.f32 %v374_v7 }
  0xa9   :  { %v111_v52 = vsub.s32 %v107_v31, %v110_v27  ;;  %vm207_vm11 = vc.u32 %v416_v50, %v412_v47  ;;  %v206_v26 = vadd.s32 %v412_v47, %v416_v50  ;;  %vm242_vm9 = vweird.f32 %v378_v13 }
  0xaa   :  { %v209_v56 = vsel %vm207_vm11, %v208_v53, %v413_v48  ;;  %v134_v39 = vsel %vm49_vm14, %v133_v33, %v109_v45 }
  0xab   :  { %v113_v55 = vsub.s32 0, %v111_v52  ;;  %v210_v57 = vadd.s32 %v209_v56, %v205_v54  ;;  %v136_v9 = vsel %vm427_vm15, 0, %v134_v39 }
  0xac   :  { %v140_v43 = vand.u32 3, %v136_v9 }
  0xad   :  { %v274_v58 = vmin.u32 %v113_v55, %v111_v52  ;;  %v211_v59 = vadd.s32 536870912, %v210_v57 }
  0xae   :  { %vm145_vm2 = vcmp.eq.s32.totalorder %v140_v43, 2  ;;  %vm142_vm3 = vcmp.eq.s32.totalorder %v140_v43, 0  ;;  %vm141_vm4 = vcmp.lt.s32.totalorder %v140_v43, 2 }
  0xaf   :  { %v115_v60 = vclz %v274_v58  ;;  %v212_v61 = vshrl.u32 %v211_v59, 30 }
  0xb1   :  { %v275_v62 = vadd.s32 4294967294, %v115_v60  ;;  %v213_v63 = vshll.u32 %v212_v61, 30  ;;  %v236_v47 = vsub.s32 4, %v212_v61 }
  0xb3   :  { %vm276_vm12 = vcmp.lt.s32.totalorder %v275_v62, 0  ;;  %v214_v1 = vsub.s32 %v210_v57, %v213_v63  ;;  %v237_v51 = vsel %vm152_vm0, %v236_v47, %v212_v61 }
  0xb4   :  { %v118_v0 = vsel %vm276_vm12, 0, %v275_v62  ;;  %v239_v55 = vsel %vm439_vm1, 0, %v237_v51 }
  0xb5   :  { %v119_v5 = vsub.s32 32, %v118_v0  ;;  %v123_v6 = vsub.s32 4294967266, %v118_v0  ;;  %v216_v8 = vsub.s32 0, %v214_v1  ;;  %v120_v10 = vshll.u32 %v111_v52, %v118_v0 }
  0xb6   :  { %v243_v56 = vand.u32 3, %v239_v55 }
  0xb7   :  { %v121_v11 = vshrl.u32 %v103_v2, %v119_v5  ;;  %v124_v12 = vadd.s32 127, %v123_v6  ;;  %v278_v14 = vmin.u32 %v216_v8, %v214_v1 }
  0xb8   :  { %vm248_vm6 = vcmp.eq.s32.totalorder %v243_v56, 2  ;;  %vm245_vm7 = vcmp.eq.s32.totalorder %v243_v56, 0  ;;  %vm244_vm8 = vcmp.lt.s32.totalorder %v243_v56, 2 }
  0xb9   :  { %v122_v15 = vor.u32 %v121_v11, %v120_v10  ;;  %v125_v16 = vshll.u32 %v124_v12, 23  ;;  %v218_v17 = vclz %v278_v14 }
  0xbb   :  { %v126_v18 = vor.u32 4788187, %v125_v16  ;;  %v279_v19 = vadd.s32 4294967294, %v218_v17  ;;  %v129_v22 = vcvt.s32.f32 %v122_v15 }
  0xbd   :  { %v127_v21 = vand.u32 2147483647, %v126_v18  ;;  %vm280_vm13 = vcmp.lt.s32.totalorder %v279_v19, 0 }
  0xbe   :  { %v221_v24 = vsel %vm280_vm13, 0, %v279_v19 }
  0xbf   :  { %v130_v23 = vmul.f32 %v129_v22, %v127_v21  ;;  %v222_v3 = vsub.s32 32, %v221_v24  ;;  %v226_v4 = vsub.s32 4294967266, %v221_v24  ;;  %v223_v29 = vshll.u32 %v214_v1, %v221_v24 }
  0xc1   :  { %v131_v28 = vxor.u32 2147483648, %v130_v23  ;;  %v224_v25 = vshrl.u32 %v206_v26, %v222_v3  ;;  %v227_v30 = vadd.s32 127, %v226_v4 }
  0xc3   :  { %v132_v32 = vsel %vm49_vm14, %v131_v28, %v130_v23  ;;  %v225_v35 = vor.u32 %v224_v25, %v223_v29  ;;  %v228_v36 = vshll.u32 %v227_v30, 23 }
  0xc4   :  { %v135_v34 = vsel %vm427_vm15, %v374_v7, %v132_v32 }
  0xc5   :  { %300 = vcosq.f32 %v135_v34  ;;  %v229_v38 = vor.u32 4788187, %v228_v36  ;;  %v232_v40 = vcvt.s32.f32 %v225_v35 }
  0xc6   :  { %302 = vsinq.f32 %v135_v34 }
  0xc7   :  { %v230_v37 = vand.u32 2147483647, %v229_v38 }
  0xc9   :  { %v233_v41 = vmul.f32 %v232_v40, %v230_v37 }
  0xcb   :  { %v234_v42 = vxor.u32 2147483648, %v233_v41 }
  0xcd   :  { %v235_v46 = vsel %vm152_vm0, %v234_v42, %v233_v41 }
  0xce   :  { %v238_v45 = vsel %vm439_vm1, %v378_v13, %v235_v46 }
  0xcf   :  { %v301_v48 = vpop.eup %300  ;;  %304 = vcosq.f32 %v238_v45 }
  0xd0   :  { %v303_v49 = vpop.eup %302  ;;  %v146_v50 = vxor.u32 2147483648, %v301_v48  ;;  %306 = vsinq.f32 %v238_v45 }
  0xd1   :  { %v143_v27 = vxor.u32 2147483648, %v303_v49 }
  0xd2   :  { %v147_v52 = vsel %vm145_vm2, %v146_v50, %v303_v49 }
  0xd3   :  { %v144_v20 = vsel %vm142_vm3, %v301_v48, %v143_v27 }
  0xd4   :  { %v148_v53 = vsel %vm141_vm4, %v144_v20, %v147_v52 }
  0xd5   :  { %v149_v54 = vsel %vm139_vm5, nan, %v148_v53 }
  0xd6   :  { %253 = vst [vmem:[#allocation2] sm:$0xff] %v149_v54 }
  0xd9   :  { %v305_v57 = vpop.eup %304 }
  0xda   :  { %v307_v58 = vpop.eup %306  ;;  %v249_v59 = vxor.u32 2147483648, %v305_v57 }
  0xdb   :  { %v246_v60 = vxor.u32 2147483648, %v307_v58 }
  0xdc   :  { %v250_v61 = vsel %vm248_vm6, %v249_v59, %v307_v58 }
  0xdd   :  { %v247_v62 = vsel %vm245_vm7, %v305_v57, %v246_v60 }
  0xde   :  { %v251_v7 = vsel %vm244_vm8, %v247_v62, %v250_v61 }
  0xdf   :  { %v252_v63 = vsel %vm242_vm9, nan, %v251_v7 }
  0xe0   :  { %254 = vst [vmem:[#allocation2 + $0x8] sm:$0xff] %v252_v63 }
  0xe1   :  { %319 = shalt.err (!%p316_p4)
}
  0xe2   :  { %s320_s22 = scalar_lea.hbm %s465_s3, 256 }
  0xe3   :  { %p321_p5 = scmp.ne.s32.totalorder %s465_s3, %s320_s22  ;;  %p324_p6 = scmp.lt.u32.totalorder %s320_s22, %s465_s3 }
  0xe5   :  { %p326_p7 = pnand %p324_p6, %p321_p5 }
  0xe7   :  { %329 = shalt.err (!%p326_p7)
}
  0xe8   :  { %s340_s27 = smov 128   ;;  %s341_s28 = smov 8  }
  0xe9   :  { %266 = dma.vmem_to_hbm [thread:$0]  %s261_s1, 256, %s465_s3, [#allocation3], %s340_s27, %s340_s27, %s341_s28  }
  0xea   :  { %330 = dma.done.wait [#allocation3], 256  }
  0xeb   :  { %331 = vsyncadd [#allocation3], 4294967040 }
  0xec   :  { %270 = vsyncpa [#allocation3], 1 }

</bundles_post_ra>
